<compile_context>
chip_gen: v5e
topology: v5e:2x2
jax: 0.10.0
libtpu: 0.0.40
codegen_flags: <defaults>
</compile_context>

<pallas_src>
import functools

import jax
import jax.numpy as jnp
from jax.experimental import pallas as pl
from jax.experimental.pallas import tpu as pltpu

_LANE = 128
_VMEM_BUDGET = 24 * 1024 * 1024  # operand residency target (safe on v7x 64 MiB)


def _round_up(x, m):
    return (x + m - 1) // m * m


def _cdiv(a, b):
    return (a + b - 1) // b


def _label_smoothing_kernel(pred_ref, target_ref, out_ref, *,
                            num_classes, smoothing, batch, block_b):
    # pred_ref:   (C, block_b) class-major logits in VMEM (batch on lanes)
    # target_ref: (1, block_b) int32 class ids in VMEM (lane-dense)
    # out_ref:    (1, 1) f32 in SMEM -- partial sum of per-example losses
    x = pred_ref[...].astype(jnp.float32)  # in-kernel upcast (keep bf16 in HBM)
    c, bb = x.shape

    # Numerically stable log-softmax over the class (sublane) axis, exact per
    # example (matches F.log_softmax).
    col_max = jnp.max(x, axis=0, keepdims=True)                    # (1, bb)
    shifted = x - col_max
    lse = jnp.log(jnp.sum(jnp.exp(shifted), axis=0, keepdims=True))
    log_probs = shifted - lse                                       # (c, bb)

    # Smoothed one-hot weights, never materializing true_dist in HBM, and a
    # single fused cross-class reduction:
    #   w[c,n] = off + (on - off) * [c == target[n]]
    #   loss_n = -sum_c w[c,n] * log_probs[c,n]
    on_val = jnp.float32(1.0 - smoothing)
    off_val = jnp.float32(smoothing / (num_classes - 1))
    class_ids = jax.lax.broadcasted_iota(jnp.int32, (c, bb), 0)
    tgt = target_ref[...]                                           # (1, bb)
    w = jnp.where(class_ids == tgt, on_val, off_val)
    per_col = -jnp.sum(w * log_probs, axis=0, keepdims=True)        # (1, bb)

    # Ragged last tile: SELECT-mask columns past the true batch size so that
    # unspecified tail data (possibly NaN/Inf) never reaches the sum.
    col_ids = pl.program_id(0) * block_b + jax.lax.broadcasted_iota(
        jnp.int32, (1, bb), 1)
    per_col = jnp.where(col_ids < batch, per_col, jnp.float32(0.0))

    out_ref[0, 0] = jnp.sum(per_col)


def _pick_block_b(b, c, itemsize, requested):
    """Choose the batch-tile width (lane axis) from the real padded VMEM cost."""
    # Padded per-column cost: pred block (C, blk) pads C up to the sublane tile
    # (8 rows for 32-bit, 16 for 16-bit); the int32 target row pads to 8
    # sublanes.  Both operands are double-buffered by the pipeline.
    sublane = max(8, 8 * (4 // max(itemsize, 1)))
    pred_col_bytes = _round_up(c, sublane) * itemsize
    tgt_col_bytes = 8 * 4
    per_col_bytes = 2 * (pred_col_bytes + tgt_col_bytes)
    max_cols = max(_LANE, _VMEM_BUDGET // per_col_bytes)

    blk = min(requested, max_cols)
    if b > 2 * _LANE:
        # Keep >= 2 grid tiles so the "parallel" batch axis can shard across
        # both v7x TensorCores (near-neutral on single-TC v5e/v6e).
        blk = min(blk, _round_up(_cdiv(b, 2), _LANE))
    if blk >= b:
        return b  # single block == full array extent (no lane-multiple needed)
    return max(_LANE, (blk // _LANE) * _LANE)


def label_smoothing_loss(pred, target, *, num_classes=10, smoothing=0.1,
                         block_b=32 * 1024):
    """pred: (B, C) float logits (f32 or bf16); target: (B,) int class ids.

    Returns a scalar f32 loss identical to PyTorch LabelSmoothingLoss.forward.
    """
    b, c = pred.shape
    assert c == num_classes

    itemsize = jnp.dtype(pred.dtype).itemsize
    blk = _pick_block_b(b, c, itemsize, block_b)
    num_tiles = _cdiv(b, blk)

    # Class-major feed: classes on sublanes, batch on lanes.  Targets become a
    # lane-dense (1, B) row.  No jnp.pad -- the ragged last tile is masked
    # in-kernel.
    pred_t = pred.T                                     # (C, B)
    tgt_row = target.astype(jnp.int32).reshape(1, b)    # (1, B)

    kernel = functools.partial(
        _label_smoothing_kernel,
        num_classes=num_classes,
        smoothing=smoothing,
        batch=b,
        block_b=blk,
    )

    cost = pl.CostEstimate(
        flops=6 * b * c,
        transcendentals=b * (c + 1),
        bytes_accessed=b * c * itemsize + b * 4 + num_tiles * 4,
    )

    partials = pl.pallas_call(
        kernel,
        out_shape=jax.ShapeDtypeStruct((num_tiles, 1), jnp.float32),
        grid=(num_tiles,),
        in_specs=[
            # pred tile: full class extent on sublanes, batch tile on lanes.
            # (Optionally pipeline_mode=pl.Buffered(3) on v7x to hide DMA
            # issue latency at the 3.2 TB/s roofline.)
            pl.BlockSpec((c, blk), lambda i: (0, i)),
            # target tile: lane-dense int32 row.
            pl.BlockSpec((1, blk), lambda i: (0, i)),
        ],
        out_specs=pl.BlockSpec(
            (1, 1), lambda i: (i, 0), memory_space=pltpu.MemorySpace.SMEM
        ),
        compiler_params=pltpu.CompilerParams(
            dimension_semantics=("parallel",),   # shard batch tiles across TCs
            vmem_limit_bytes=32 * 1024 * 1024,   # <= v7x-safe 48 MiB residency
        ),
        cost_estimate=cost,
    )(pred_t, tgt_row)

    return jnp.sum(partials) / jnp.float32(b)


def _reference(pred, target, num_classes=10, smoothing=0.1):
    # Pure-JAX reference mirroring the PyTorch forward.
    log_probs = jax.nn.log_softmax(pred.astype(jnp.float32), axis=1)
    off = smoothing / (num_classes - 1)
    true_dist = jnp.full_like(log_probs, off)
    true_dist = true_dist.at[jnp.arange(pred.shape[0]), target].set(1.0 - smoothing)
    return jnp.mean(jnp.sum(-true_dist * log_probs, axis=1))


if __name__ == "__main__":
    key = jax.random.PRNGKey(0)
    kp, kt = jax.random.split(key)

    # Small shapes consistent with the module (MNIST-style classifier head).
    batch, num_classes = 8, 10
    pred = jax.random.normal(kp, (batch, num_classes), dtype=jnp.float32)
    target = jax.random.randint(kt, (batch,), 0, num_classes, dtype=jnp.int32)

    loss = label_smoothing_loss(pred, target, num_classes=num_classes, smoothing=0.1)
    loss = jax.block_until_ready(loss)
    ref = _reference(pred, target, num_classes=num_classes, smoothing=0.1)
    assert jnp.allclose(loss, ref, atol=1e-5, rtol=1e-5), (loss, ref)

    # Second check: multi-tile parallel batch grid with a ragged last tile
    # (300 = 2*128 + 44), exercising the in-kernel column mask.
    kp2, kt2 = jax.random.split(kt)
    batch2 = 300
    pred2 = jax.random.normal(kp2, (batch2, num_classes), dtype=jnp.float32)
    target2 = jax.random.randint(kt2, (batch2,), 0, num_classes, dtype=jnp.int32)
    loss2 = label_smoothing_loss(
        pred2, target2, num_classes=num_classes, smoothing=0.1, block_b=128
    )
    loss2 = jax.block_until_ready(loss2)
    ref2 = _reference(pred2, target2, num_classes=num_classes, smoothing=0.1)
    assert jnp.allclose(loss2, ref2, atol=1e-5, rtol=1e-5), (loss2, ref2)

    print("KERNEL_OK")
</pallas_src>

<mosaic_0001>
module attributes {stable_mosaic.version = 11 : i64} {
  func.func @_label_smoothing_kernel(%arg0: i32, %arg1: memref<10x8xf32, #tpu.memory_space<vmem>>, %arg2: memref<1x8xi32, #tpu.memory_space<vmem>>, %arg3: memref<1x1xf32, #tpu.memory_space<smem>>) attributes {dimension_semantics = [#tpu.dimension_semantics<parallel>], iteration_bounds = array<i64: 1>, scalar_prefetch = 0 : i64, scratch_operands = 0 : i64, tpu.core_type = #tpu.core_type<tc>, window_params = [{transform_indices = @transform_0, window_bounds = array<i64: 10, 8>}, {transform_indices = @transform_1, window_bounds = array<i64: 1, 8>}, {transform_indices = @transform_2, window_bounds = array<i64: 1, 1>}]} {
    %c0 = arith.constant 0 : index
    %c0_0 = arith.constant 0 : index
    %0 = vector.load %arg1[%c0, %c0_0] : memref<10x8xf32, #tpu.memory_space<vmem>>, vector<10x8xf32>
    %cst = arith.constant dense<0xFF800000> : vector<8xf32>
    %1 = vector.multi_reduction <maximumf>, %0, %cst [0] : vector<10x8xf32> to vector<8xf32>
    %2 = vector.shape_cast %1 : vector<8xf32> to vector<1x8xf32>
    %3 = vector.broadcast %2 : vector<1x8xf32> to vector<10x8xf32>
    %4 = arith.subf %0, %3 : vector<10x8xf32>
    %5 = math.exp %4 : vector<10x8xf32>
    %cst_1 = arith.constant dense<0.000000e+00> : vector<8xf32>
    %6 = vector.multi_reduction <add>, %5, %cst_1 [0] : vector<10x8xf32> to vector<8xf32>
    %7 = vector.shape_cast %6 : vector<8xf32> to vector<1x8xf32>
    %8 = math.log %7 : vector<1x8xf32>
    %9 = vector.broadcast %8 : vector<1x8xf32> to vector<10x8xf32>
    %10 = arith.subf %4, %9 : vector<10x8xf32>
    %11 = tpu.iota {dimensions = array<i32: 0>} : vector<10x8xi32>
    %c0_2 = arith.constant 0 : index
    %c0_3 = arith.constant 0 : index
    %12 = vector.load %arg2[%c0_2, %c0_3] : memref<1x8xi32, #tpu.memory_space<vmem>>, vector<1x8xi32>
    %13 = vector.broadcast %12 : vector<1x8xi32> to vector<10x8xi32>
    %14 = arith.cmpi eq, %11, %13 : vector<10x8xi32>
    %cst_4 = arith.constant 0.899999976 : f32
    %cst_5 = arith.constant 0.0111111114 : f32
    %15 = vector.broadcast %cst_4 : f32 to vector<10x8xf32>
    %16 = vector.broadcast %cst_5 : f32 to vector<10x8xf32>
    %17 = arith.select %14, %15, %16 : vector<10x8xi1>, vector<10x8xf32>
    %18 = arith.mulf %17, %10 : vector<10x8xf32>
    %cst_6 = arith.constant dense<0.000000e+00> : vector<8xf32>
    %19 = vector.multi_reduction <add>, %18, %cst_6 [0] : vector<10x8xf32> to vector<8xf32>
    %20 = vector.shape_cast %19 : vector<8xf32> to vector<1x8xf32>
    %cst_7 = arith.constant 0.000000e+00 : f32
    %21 = vector.broadcast %cst_7 : f32 to vector<1x8xf32>
    %22 = arith.subf %21, %20 : vector<1x8xf32>
    %c8_i32 = arith.constant 8 : i32
    %23 = arith.muli %arg0, %c8_i32 : i32
    %24 = tpu.iota {dimensions = array<i32: 1>} : vector<1x8xi32>
    %25 = vector.broadcast %23 : i32 to vector<1x8xi32>
    %26 = arith.addi %25, %24 : vector<1x8xi32>
    %c8_i32_8 = arith.constant 8 : i32
    %27 = vector.broadcast %c8_i32_8 : i32 to vector<1x8xi32>
    %28 = arith.cmpi slt, %26, %27 : vector<1x8xi32>
    %cst_9 = arith.constant 0.000000e+00 : f32
    %29 = vector.broadcast %cst_9 : f32 to vector<1x8xf32>
    %30 = arith.select %28, %22, %29 : vector<1x8xi1>, vector<1x8xf32>
    %31 = vector.shape_cast %30 : vector<1x8xf32> to vector<1x1x8xf32>
    %cst_10 = arith.constant dense<0.000000e+00> : vector<1xf32>
    %32 = vector.multi_reduction <add>, %31, %cst_10 [1, 2] : vector<1x1x8xf32> to vector<1xf32>
    %33 = vector.shape_cast %32 : vector<1xf32> to vector<1x1x1xf32>
    %34 = vector.extract %33[0, 0, 0] : f32 from vector<1x1x1xf32>
    %c0_11 = arith.constant 0 : index
    %c0_12 = arith.constant 0 : index
    %35 = memref.load %arg3[%c0_11, %c0_12] : memref<1x1xf32, #tpu.memory_space<smem>>
    memref.store %34, %arg3[%c0_11, %c0_12] : memref<1x1xf32, #tpu.memory_space<smem>>
    return
  }
  func.func @transform_0(%arg0: i32) -> (i32, i32) {
    %c0_i32 = arith.constant 0 : i32
    %c0_i32_0 = arith.constant 0 : i32
    return %c0_i32, %arg0 : i32, i32
  }
  func.func @transform_1(%arg0: i32) -> (i32, i32) {
    %c0_i32 = arith.constant 0 : i32
    %c0_i32_0 = arith.constant 0 : i32
    return %c0_i32, %arg0 : i32, i32
  }
  func.func @transform_2(%arg0: i32) -> (i32, i32) {
    %c0_i32 = arith.constant 0 : i32
    %c0_i32_0 = arith.constant 0 : i32
    return %arg0, %c0_i32 : i32, i32
  }
}

</mosaic_0001>

<bundles_post_ra>
// kernel: tpu_custom_call.1
= control target key start
LH: loop header
LB: loop body
LE: loop exit
PB: predicated region body
PF: predicated region fallthrough
CT: control target
= control target key end

     0   :  { %vm14_vm0 = vcmask 64512   ;;  %vm16_vm1 = vcmask 58368   ;;  %s160_s0 = inlined_call_operand.vmem [shape: f32[10,8], index: 0, kind: input, shape index: {}]   ;;  %s161_s1 = inlined_call_operand.vmem [shape: s32[1,8], index: 1, kind: input, shape index: {}]   ;;  %s162_s2 = inlined_call_operand.hbm [shape: f32[1,1], index: 2, kind: output, shape index: {}]  }
   0x1   :  { %v12_v0 = vld [vmem:[%s160_s0] sm:$0xff]  ;;  %v13_v1 = vld [vmem:[%s160_s0 + $0x8] sm:$0x3] }
   0x2   :  { %v15_v2 = vsel %vm14_vm0, %v12_v0, -inf  ;;  %v17_v3 = vsel %vm16_vm1, %v13_v1, -inf }
   0x3   :  { %7 = vsyncpa [#allocation3], 0  ;;  %v18_v4 = vmax.f32 %v15_v2, %v17_v3  ;;  %v44_v23 = vlaneseq  ;;  %v104_v29 = vld [vmem:[%s161_s1] ss:$0 sm:$0xff]  ;;  %v125_v32 = vmov 0.011111111  }
   0x4   :  { %vm72_vm5 = vcmask 57344   ;;  %s90_s15 = sshll.u32 %s162_s2, 4  ;;  %s126_s17 = smov [#allocation2]   ;;  %s91_s15 = int_to_ptr.hbm [resolvable:$true] %s90_s15 }
   0x5   :  { %v19_v5 = vrot.slane %v18_v4, 4  ;;  %v45_v26 = vshrl.u32 %v44_v23, 7  ;;  %v67_v46 = vand.u32 127, %v44_v23 }
   0x7   :  { %v20_v6 = vmax.f32 %v18_v4, %v19_v5  ;;  %v46_v28 = vadd.s32 8, %v45_v26  ;;  %vm49_vm2 = vcmp.eq.s32.totalorder %v45_v26, %v104_v29  ;;  %vm70_vm4 = vcmp.lt.s32.totalorder %v67_v46, 8 }
   0x8   :  { %v51_v33 = vsel %vm49_vm2, 0.9, %v125_v32 }
   0x9   :  { %v21_v7 = vrot.slane %v20_v6, 2  ;;  %vm50_vm3 = vcmp.eq.s32.totalorder %v46_v28, %v104_v29 }
   0xa   :  { %v52_v34 = vsel %vm50_vm3, 0.9, %v125_v32 }
   0xb   :  { %v22_v8 = vmax.f32 %v20_v6, %v21_v7 }
   0xd   :  { %v23_v9 = vrot.slane %v22_v8, 1 }
   0xf   :  { %v24_v10 = vmax.f32 %v22_v8, %v23_v9 }
  0x11   :  { %v25_v11 = vsub.f32 %v12_v0, %v24_v10  ;;  %v26_v12 = vsub.f32 %v13_v1, %v24_v10 }
  0x13   :  { %v27_v13 = vmul.f32 1.442695, %v25_v11  ;;  %v29_v14 = vmul.f32 1.442695, %v26_v12 }
  0x15   :  { %105 = vpow2.f32 %v27_v13 }
  0x16   :  { %107 = vpow2.f32 %v29_v14 }
  0x1b   :  { %v106_v15 = vpop.eup %105 }
  0x1c   :  { %v108_v16 = vpop.eup %107  ;;  %v31_v17 = vsel %vm14_vm0, %v106_v15, 0.0 }
  0x1d   :  { %v32_v18 = vsel %vm16_vm1, %v108_v16, 0.0 }
  0x1e   :  { %v33_v19 = vadd.f32 %v32_v18, %v31_v17 }
  0x20   :  { %v34_v20 = vrot.slane %v33_v19, 4 }
  0x22   :  { %v35_v21 = vadd.f32 %v34_v20, %v33_v19 }
  0x24   :  { %v36_v22 = vrot.slane %v35_v21, 2 }
  0x26   :  { %v37_v24 = vadd.f32 %v36_v22, %v35_v21 }
  0x28   :  { %v38_v25 = vrot.slane %v37_v24, 1 }
  0x2a   :  { %v39_v27 = vadd.f32 %v38_v25, %v37_v24 }
  0x2c   :  { %109 = vlog2.f32 %v39_v27 }
  0x32   :  { %v110_v30 = vpop.eup %109 }
  0x33   :  { %v41_v31 = vmul.f32 0.6931472, %v110_v30 }
  0x35   :  { %v42_v35 = vsub.f32 %v25_v11, %v41_v31  ;;  %v43_v36 = vsub.f32 %v26_v12, %v41_v31 }
  0x37   :  { %v53_v37 = vmul.f32 %v51_v33, %v42_v35  ;;  %v54_v38 = vmul.f32 %v52_v34, %v43_v36 }
  0x39   :  { %v55_v39 = vsel %vm14_vm0, %v53_v37, 0.0  ;;  %v56_v40 = vsel %vm16_vm1, %v54_v38, 0.0 }
  0x3a   :  { %v57_v41 = vadd.f32 %v56_v40, %v55_v39 }
  0x3c   :  { %v58_v42 = vrot.slane %v57_v41, 4 }
  0x3e   :  { %v59_v43 = vadd.f32 %v58_v42, %v57_v41 }
  0x40   :  { %v60_v44 = vrot.slane %v59_v43, 2 }
  0x42   :  { %v61_v45 = vadd.f32 %v60_v44, %v59_v43 }
  0x44   :  { %v62_v47 = vrot.slane %v61_v45, 1 }
  0x46   :  { %v63_v48 = vadd.f32 %v62_v47, %v61_v45 }
  0x48   :  { %v64_v49 = vsub.f32 0.0, %v63_v48 }
  0x4a   :  { %v71_v50 = vsel %vm70_vm4, %v64_v49, 0.0 }
  0x4b   :  { %v73_v51 = vsel %vm72_vm5, %v71_v50, 0.0 }
  0x4c   :  { %74 = vadd.xlane.f32.xlu0 %v73_v51 }
  0xbf   :  { %v75_v52 = vpop.xlane.xlu0 %74 }
  0xc0   :  { %v76_v53 = vrot.slane %v75_v52, 4 }
  0xc2   :  { %v77_v54 = vadd.f32 %v76_v53, %v75_v52 }
  0xc4   :  { %v78_v55 = vrot.slane %v77_v54, 2 }
  0xc6   :  { %v79_v56 = vadd.f32 %v78_v55, %v77_v54 }
  0xc8   :  { %v80_v57 = vrot.slane %v79_v56, 1 }
  0xca   :  { %v81_v58 = vadd.f32 %v80_v57, %v79_v56 }
  0xcc   :  { %100 = vpush %v81_v58 }
  0xfd   :  { %s101_s16 = spop %100 }
  0xfe   :  { %84 = sst [smem:[#allocation2]] %s101_s16 }
  0xff   :  { %93 = dma.smem_to_hbm %s126_s17, 16, %s91_s15, [#allocation3]  }
 0x100   :  { %123 = dma.done.wait [#allocation3], 16  }
 0x101   :  { %124 = vsyncadd [#allocation3], 4294967280 }
 0x102   :  { %98 = sfence }
 0x103   :  { %99 = vsyncpa [#allocation3], 1 }

</bundles_post_ra>
